<compile_context>
chip_gen: v7x
topology: tpu7x:2x2x1
jax: 0.10.0
libtpu: 0.0.40
codegen_flags: <defaults>
</compile_context>

<pallas_src>
import functools

import jax
import jax.numpy as jnp
from jax.experimental import pallas as pl
from jax.experimental.pallas import tpu as pltpu


def _round_up(x, m):
    return ((x + m - 1) // m) * m


def _wce_kernel(pred_ref, gold_ref, w_ref, lpart_ref, wpart_ref):
    """Per-tile partial sums of weighted NLL and of gathered class weights.

    Each grid step writes its own (1, 8, 128) partial-sum slab (no cross-step
    accumulator), so the row-tile axis can be marked "parallel".
    """
    logits = pred_ref[...].astype(jnp.float32)                 # (TN, Cp) f32 math
    gold = gold_ref[...]                                       # (TN, 1) int32
    wrow = w_ref[...]                                          # (1, Cp) f32 (pre-cast)

    # numerically stable log-softmax pieces
    m = jnp.max(logits, axis=-1, keepdims=True)                # (TN, 1)
    shifted = logits - m                                       # (TN, Cp)
    lse = jnp.log(jnp.sum(jnp.exp(shifted), axis=-1, keepdims=True))  # (TN, 1)

    # one-hot gather of target logit and per-sample class weight.
    # Padded rows carry gold == -1 -> onehot all zero -> w == 0 -> contribute 0
    # to both sums; padded classes carry weight 0 and logit -1e30 (exp -> 0).
    class_ids = jax.lax.broadcasted_iota(jnp.int32, logits.shape, 1)  # (TN, Cp)
    onehot = (class_ids == gold).astype(jnp.float32)           # (TN, Cp)
    tgt = jnp.sum(shifted * onehot, axis=-1, keepdims=True)    # (TN, 1)
    w = jnp.sum(wrow * onehot, axis=-1, keepdims=True)         # (TN, 1)

    nll = lse - tgt                                            # (TN, 1)

    lsum = jnp.sum(w * nll)                                    # scalar partial
    wsum = jnp.sum(w)                                          # scalar partial
    lpart_ref[...] = jnp.zeros(lpart_ref.shape, jnp.float32) + lsum
    wpart_ref[...] = jnp.zeros(wpart_ref.shape, jnp.float32) + wsum


@functools.partial(jax.jit, static_argnames=("tile_n",))
def weighted_cross_entropy(pred, gold, class_weights, *, tile_n=None):
    """pred: (N, C) logits (any float dtype); gold: (N,) ints; class_weights: (C,)."""
    N, C = pred.shape
    pred_bytes = pred.dtype.itemsize

    # Lane-dense class axis: pad C to a multiple of 128.
    C_pad = _round_up(C, 128)

    # Row tile: largest tile whose double-buffered pred slab fits a conservative
    # VMEM budget (safe on v7x: 64 MiB physical / 32 MiB scoped default).
    if tile_n is None:
        budget = 24 * 1024 * 1024                       # bytes for 2x pred tile
        tile_n = budget // (2 * C_pad * pred_bytes)
        tile_n = int(max(8, min(1024, tile_n)))
    tile_n = max(8, (int(tile_n) // 8) * 8)
    tile_n = min(tile_n, _round_up(N, 8))               # don't over-pad tiny batches

    num_blocks = -(-N // tile_n)                        # cdiv, no N % tile_n assert
    N_pad = num_blocks * tile_n

    gold2d = gold.astype(jnp.int32).reshape(N, 1)
    w1d = class_weights.astype(jnp.float32)

    if C_pad != C:
        # huge negative logit -> exp contributes 0; padded class weight = 0
        pred = jnp.pad(pred, ((0, 0), (0, C_pad - C)), constant_values=-1e30)
        w1d = jnp.pad(w1d, (0, C_pad - C))
    if N_pad != N:
        pred = jnp.pad(pred, ((0, N_pad - N), (0, 0)))
        gold2d = jnp.pad(gold2d, ((0, N_pad - N), (0, 0)), constant_values=-1)
    w2d = w1d.reshape(1, C_pad)

    # Explicit scoped-VMEM limit (v5e default is only 16 MiB) with headroom.
    vmem_needed = (2 * tile_n * C_pad * pred_bytes      # pred, double-buffered
                   + 2 * tile_n * 4                     # gold, double-buffered
                   + 2 * C_pad * 4                      # class weights
                   + 4 * 8 * 128 * 4)                   # two partial-sum outputs
    vmem_limit = int(min(max(vmem_needed + (4 << 20), 16 << 20), 100 << 20))

    cost = pl.CostEstimate(
        flops=8 * N_pad * C_pad,
        transcendentals=N_pad * C_pad + 2 * N_pad,
        bytes_accessed=(N_pad * C_pad * pred_bytes + N_pad * 4 + C_pad * 4
                        + 2 * num_blocks * 8 * 128 * 4),
    )

    lpart, wpart = pl.pallas_call(
        _wce_kernel,
        out_shape=(
            jax.ShapeDtypeStruct((num_blocks, 8, 128), jnp.float32),
            jax.ShapeDtypeStruct((num_blocks, 8, 128), jnp.float32),
        ),
        grid_spec=pltpu.PrefetchScalarGridSpec(
            num_scalar_prefetch=0,
            grid=(num_blocks,),
            in_specs=[
                pl.BlockSpec((tile_n, C_pad), lambda i: (i, 0)),  # pred row tile
                pl.BlockSpec((tile_n, 1), lambda i: (i, 0)),      # gold row tile
                pl.BlockSpec((1, C_pad), lambda i: (0, 0)),       # weights (resident)
            ],
            out_specs=[
                pl.BlockSpec((1, 8, 128), lambda i: (i, 0, 0)),   # per-block lsum
                pl.BlockSpec((1, 8, 128), lambda i: (i, 0, 0)),   # per-block wsum
            ],
        ),
        compiler_params=pltpu.CompilerParams(
            dimension_semantics=("parallel",),   # independent blocks -> both TCs on v7x
            vmem_limit_bytes=vmem_limit,
        ),
        cost_estimate=cost,
    )(pred, gold2d, w2d)

    # 'mean' reduction with class weights: normalize by sum of gathered weights.
    lsum = jnp.sum(lpart[:, 0, 0])
    wsum = jnp.sum(wpart[:, 0, 0])
    return (lsum / wsum).astype(jnp.float32)


def _reference(pred, gold, class_weights):
    logp = jax.nn.log_softmax(pred.astype(jnp.float32), axis=-1)
    nll = -jnp.take_along_axis(logp, gold[:, None], axis=-1)[:, 0]
    w = class_weights[gold]
    return jnp.sum(w * nll) / jnp.sum(w)


if __name__ == "__main__":
    key = jax.random.PRNGKey(0)
    k1, k2 = jax.random.split(key)

    # small batch of 64 samples, 32 classes (class axis gets padded to 128)
    N, C = 64, 32
    pred = jax.random.normal(k1, (N, C), dtype=jnp.float32)
    gold = jax.random.randint(k2, (N,), 0, C, dtype=jnp.int32)
    class_weights = jnp.linspace(0.5, 2.0, C, dtype=jnp.float32)

    loss = weighted_cross_entropy(pred, gold, class_weights)
    jax.block_until_ready(loss)
    ref = _reference(pred, gold, class_weights)
    assert jnp.allclose(loss, ref, rtol=1e-5, atol=1e-5), (loss, ref)

    # ragged N (exercises row padding / gold=-1 masking)
    N2 = 67
    pred2 = jax.random.normal(k1, (N2, C), dtype=jnp.float32)
    gold2 = jax.random.randint(k2, (N2,), 0, C, dtype=jnp.int32)
    loss2 = weighted_cross_entropy(pred2, gold2, class_weights)
    jax.block_until_ready(loss2)
    ref2 = _reference(pred2, gold2, class_weights)
    assert jnp.allclose(loss2, ref2, rtol=1e-5, atol=1e-5), (loss2, ref2)

    print("KERNEL_OK")
</pallas_src>

<mosaic_0001>
module attributes {stable_mosaic.version = 11 : i64} {
  func.func @_wce_kernel(%arg0: i32, %arg1: memref<64x128xf32, #tpu.memory_space<vmem>>, %arg2: memref<64x1xi32, #tpu.memory_space<vmem>>, %arg3: memref<1x128xf32, #tpu.memory_space<vmem>>, %arg4: memref<1x8x128xf32, #tpu.memory_space<vmem>>, %arg5: memref<1x8x128xf32, #tpu.memory_space<vmem>>) attributes {dimension_semantics = [#tpu.dimension_semantics<parallel>], iteration_bounds = array<i64: 1>, scalar_prefetch = 0 : i64, scratch_operands = 0 : i64, tpu.core_type = #tpu.core_type<tc>, window_params = [{transform_indices = @transform_0, window_bounds = array<i64: 64, 128>}, {transform_indices = @transform_1, window_bounds = array<i64: 64, 1>}, {pipeline_mode = #tpu.pipeline_mode<synchronous>, transform_indices = @transform_2, window_bounds = array<i64: 1, 128>}, {transform_indices = @transform_3, window_bounds = array<i64: 1, 8, 128>}, {transform_indices = @transform_4, window_bounds = array<i64: 1, 8, 128>}]} {
    %c0 = arith.constant 0 : index
    %c0_0 = arith.constant 0 : index
    %0 = vector.load %arg1[%c0, %c0_0] : memref<64x128xf32, #tpu.memory_space<vmem>>, vector<64x128xf32>
    %c0_1 = arith.constant 0 : index
    %c0_2 = arith.constant 0 : index
    %1 = vector.load %arg2[%c0_1, %c0_2] : memref<64x1xi32, #tpu.memory_space<vmem>>, vector<64x1xi32>
    %c0_3 = arith.constant 0 : index
    %c0_4 = arith.constant 0 : index
    %2 = vector.load %arg3[%c0_3, %c0_4] : memref<1x128xf32, #tpu.memory_space<vmem>>, vector<1x128xf32>
    %cst = arith.constant dense<0xFF800000> : vector<64xf32>
    %3 = vector.multi_reduction <maximumf>, %0, %cst [1] : vector<64x128xf32> to vector<64xf32>
    %4 = vector.shape_cast %3 : vector<64xf32> to vector<64x1xf32>
    %5 = vector.broadcast %4 : vector<64x1xf32> to vector<64x128xf32>
    %6 = arith.subf %0, %5 : vector<64x128xf32>
    %7 = math.exp %6 : vector<64x128xf32>
    %cst_5 = arith.constant dense<0.000000e+00> : vector<64xf32>
    %8 = vector.multi_reduction <add>, %7, %cst_5 [1] : vector<64x128xf32> to vector<64xf32>
    %9 = vector.shape_cast %8 : vector<64xf32> to vector<64x1xf32>
    %10 = math.log %9 : vector<64x1xf32>
    %11 = tpu.iota {dimensions = array<i32: 1>} : vector<64x128xi32>
    %12 = vector.broadcast %1 : vector<64x1xi32> to vector<64x128xi32>
    %13 = arith.cmpi eq, %11, %12 : vector<64x128xi32>
    %14 = arith.extui %13 : vector<64x128xi1> to vector<64x128xi32>
    %15 = arith.sitofp %14 : vector<64x128xi32> to vector<64x128xf32>
    %16 = arith.mulf %6, %15 : vector<64x128xf32>
    %cst_6 = arith.constant dense<0.000000e+00> : vector<64xf32>
    %17 = vector.multi_reduction <add>, %16, %cst_6 [1] : vector<64x128xf32> to vector<64xf32>
    %18 = vector.shape_cast %17 : vector<64xf32> to vector<64x1xf32>
    %19 = vector.broadcast %2 : vector<1x128xf32> to vector<64x128xf32>
    %20 = arith.mulf %19, %15 : vector<64x128xf32>
    %cst_7 = arith.constant dense<0.000000e+00> : vector<64xf32>
    %21 = vector.multi_reduction <add>, %20, %cst_7 [1] : vector<64x128xf32> to vector<64xf32>
    %22 = vector.shape_cast %21 : vector<64xf32> to vector<64x1xf32>
    %23 = arith.subf %10, %18 : vector<64x1xf32>
    %24 = arith.mulf %22, %23 : vector<64x1xf32>
    %25 = vector.shape_cast %24 : vector<64x1xf32> to vector<1x64x1xf32>
    %cst_8 = arith.constant dense<0.000000e+00> : vector<1xf32>
    %26 = vector.multi_reduction <add>, %25, %cst_8 [1, 2] : vector<1x64x1xf32> to vector<1xf32>
    %27 = vector.shape_cast %26 : vector<1xf32> to vector<1x1x1xf32>
    %28 = vector.extract %27[0, 0, 0] : f32 from vector<1x1x1xf32>
    %29 = vector.shape_cast %22 : vector<64x1xf32> to vector<1x64x1xf32>
    %cst_9 = arith.constant dense<0.000000e+00> : vector<1xf32>
    %30 = vector.multi_reduction <add>, %29, %cst_9 [1, 2] : vector<1x64x1xf32> to vector<1xf32>
    %31 = vector.shape_cast %30 : vector<1xf32> to vector<1x1x1xf32>
    %32 = vector.extract %31[0, 0, 0] : f32 from vector<1x1x1xf32>
    %cst_10 = arith.constant 0.000000e+00 : f32
    %33 = vector.broadcast %cst_10 : f32 to vector<1x8x128xf32>
    %34 = vector.broadcast %28 : f32 to vector<1x8x128xf32>
    %35 = arith.addf %33, %34 : vector<1x8x128xf32>
    %c0_11 = arith.constant 0 : index
    %c0_12 = arith.constant 0 : index
    %c0_13 = arith.constant 0 : index
    %36 = vector.load %arg4[%c0_11, %c0_12, %c0_13] : memref<1x8x128xf32, #tpu.memory_space<vmem>>, vector<1x8x128xf32>
    tpu.vector_store %arg4[%c0_11, %c0_12, %c0_13], %35 {strides = array<i32>} : memref<1x8x128xf32, #tpu.memory_space<vmem>>, vector<1x8x128xf32>,
    %cst_14 = arith.constant 0.000000e+00 : f32
    %37 = vector.broadcast %cst_14 : f32 to vector<1x8x128xf32>
    %38 = vector.broadcast %32 : f32 to vector<1x8x128xf32>
    %39 = arith.addf %37, %38 : vector<1x8x128xf32>
    %c0_15 = arith.constant 0 : index
    %c0_16 = arith.constant 0 : index
    %c0_17 = arith.constant 0 : index
    %40 = vector.load %arg5[%c0_15, %c0_16, %c0_17] : memref<1x8x128xf32, #tpu.memory_space<vmem>>, vector<1x8x128xf32>
    tpu.vector_store %arg5[%c0_15, %c0_16, %c0_17], %39 {strides = array<i32>} : memref<1x8x128xf32, #tpu.memory_space<vmem>>, vector<1x8x128xf32>,
    return
  }
  func.func @transform_0(%arg0: i32) -> (i32, i32) {
    %c0_i32 = arith.constant 0 : i32
    %c0_i32_0 = arith.constant 0 : i32
    return %arg0, %c0_i32 : i32, i32
  }
  func.func @transform_1(%arg0: i32) -> (i32, i32) {
    %c0_i32 = arith.constant 0 : i32
    %c0_i32_0 = arith.constant 0 : i32
    return %arg0, %c0_i32 : i32, i32
  }
  func.func @transform_2(%arg0: i32) -> (i32, i32) {
    %c0_i32 = arith.constant 0 : i32
    %c0_i32_0 = arith.constant 0 : i32
    %c0_i32_1 = arith.constant 0 : i32
    return %c0_i32, %c0_i32_0 : i32, i32
  }
  func.func @transform_3(%arg0: i32) -> (i32, i32, i32) {
    %c0_i32 = arith.constant 0 : i32
    %c0_i32_0 = arith.constant 0 : i32
    %c0_i32_1 = arith.constant 0 : i32
    return %arg0, %c0_i32, %c0_i32_0 : i32, i32, i32
  }
  func.func @transform_4(%arg0: i32) -> (i32, i32, i32) {
    %c0_i32 = arith.constant 0 : i32
    %c0_i32_0 = arith.constant 0 : i32
    %c0_i32_1 = arith.constant 0 : i32
    return %arg0, %c0_i32, %c0_i32_0 : i32, i32, i32
  }
}

</mosaic_0001>

<bundles_post_ra>
// kernel: weighted_cross_entropy.1
= control target key start
LH: loop header
LB: loop body
LE: loop exit
PB: predicated region body
PF: predicated region fallthrough
CT: control target
= control target key end

     0   :  { %v337_v2 = vmov 0   ;;  %v105_v22 = vlaneseq  ;;  %v338_v30 = vmov 0.0   ;;  %vm225_vm8 = vcmask 7168   ;;  %s477_s0 = inlined_call_operand.vmem [shape: f32[64,128], index: 0, kind: input, shape index: {}]   ;;  %s478_s1 = inlined_call_operand.vmem [shape: s32[64,1], index: 1, kind: input, shape index: {}]   ;;  %s479_s2 = inlined_call_operand.vmem [shape: f32[1,128], index: 2, kind: input, shape index: {}]   ;;  %s480_s3 = inlined_call_operand.vmem [shape: f32[1,8,128], index: 3, kind: output, shape index: {0}]   ;;  %s481_s4 = inlined_call_operand.vmem [shape: f32[1,8,128], index: 4, kind: output, shape index: {1}]  }
   0x1   :  { %v18_v0 = vld [vmem:[%s477_s0 + $0x10] sm:$0xff]  ;;  %v16_v1 = vld [vmem:[%s477_s0] sm:$0xff]  ;;  %304 = vset.pattern.permute.xlu1 %v337_v2  ;;  %303 = vset.pattern.permute.xlu0 %v337_v2  ;;  %v19_v3 = vld [vmem:[%s477_s0 + $0x18] sm:$0xff] }
   0x2   :  { %37 = vmax.xlane.f32.xlu1 %v18_v0  ;;  %33 = vmax.xlane.f32.xlu0 %v16_v1  ;;  %v17_v4 = vld [vmem:[%s477_s0 + $0x8] sm:$0xff]  ;;  %v20_v6 = vld [vmem:[%s477_s0 + $0x20] sm:$0xff]  ;;  %v388_v7 = vld [vmem:[%s477_s0 + $0x38] sm:$0xff]  ;;  %v421_v25 = vand.u32 127, %v105_v22 }
   0x3   :  { %v379_v5 = vld [vmem:[%s477_s0 + $0x28] sm:$0xff]  ;;  %v393_v8 = vld [vmem:[%s477_s0 + $0x30] sm:$0xff]  ;;  %v24_v11 = vld [vmem:[%s478_s1] sm:$0xff] }
   0x4   :  { %v25_v9 = vld [vmem:[%s478_s1 + $0x8] sm:$0xff]  ;;  %v26_v10 = vld [vmem:[%s478_s1 + $0x10] sm:$0xff]  ;;  %v27_v12 = vld [vmem:[%s478_s1 + $0x18] sm:$0xff] }
   0x5   :  { %v28_v13 = vld [vmem:[%s478_s1 + $0x20] sm:$0xff]  ;;  %v29_v14 = vld [vmem:[%s478_s1 + $0x28] sm:$0xff]  ;;  %v30_v15 = vld [vmem:[%s478_s1 + $0x30] sm:$0xff] }
   0x6   :  { %39 = vmax.xlane.f32.xlu1 %v19_v3  ;;  %35 = vmax.xlane.f32.xlu0 %v17_v4  ;;  %v31_v16 = vld [vmem:[%s478_s1 + $0x38] sm:$0xff]  ;;  %v426_v28 = vld [vmem:[%s479_s2] ss:$0 sm:$0xff] }
   0xa   :  { %43 = vmax.xlane.f32.xlu1 %v379_v5  ;;  %41 = vmax.xlane.f32.xlu0 %v20_v6 }
   0xe   :  { %47 = vmax.xlane.f32.xlu1 %v388_v7  ;;  %45 = vmax.xlane.f32.xlu0 %v393_v8 }
  0x1f   :  { %111 = vperm.xlu1 %304, %v25_v9  }
  0x23   :  { %114 = vperm.xlu1 %304, %v26_v10  }
  0x24   :  { %108 = vperm.xlu0 %303, %v24_v11  }
  0x27   :  { %117 = vperm.xlu1 %304, %v27_v12  }
  0x2b   :  { %120 = vperm.xlu1 %304, %v28_v13  }
  0x2f   :  { %123 = vperm.xlu1 %304, %v29_v14  }
  0x33   :  { %126 = vperm.xlu1 %304, %v30_v15  }
  0x37   :  { %129 = vperm.xlu1 %304, %v31_v16  }
  0x8f   :  { %v38_v17 = vpop.xlane.xlu1 %37  ;;  %v34_v18 = vpop.xlane.xlu0 %33 }
  0x90   :  { %v51_v35 = vsub.f32 %v18_v0, %v38_v17  ;;  %v49_v36 = vsub.f32 %v16_v1, %v34_v18 }
  0x92   :  { %v61_v43 = vmul.f32 1.442695, %v51_v35  ;;  %v57_v45 = vmul.f32 1.442695, %v49_v36 }
  0x93   :  { %v40_v19 = vpop.xlane.xlu1 %39  ;;  %v36_v20 = vpop.xlane.xlu0 %35 }
  0x94   :  { %v50_v29 = vsub.f32 %v17_v4, %v36_v20  ;;  %v52_v44 = vsub.f32 %v19_v3, %v40_v19 }
  0x96   :  { %v59_v37 = vmul.f32 1.442695, %v50_v29  ;;  %v63_v51 = vmul.f32 1.442695, %v52_v44 }
  0x97   :  { %v44_v21 = vpop.xlane.xlu1 %43  ;;  %v42_v23 = vpop.xlane.xlu0 %41 }
  0x98   :  { %305 = vpow2.f32 %v59_v37  ;;  %v53_v46 = vsub.f32 %v20_v6, %v42_v23  ;;  %v54_v52 = vsub.f32 %v379_v5, %v44_v21 }
  0x99   :  { %307 = vpow2.f32 %v61_v43 }
  0x9a   :  { %309 = vpow2.f32 %v57_v45  ;;  %v65_v53 = vmul.f32 1.442695, %v53_v46  ;;  %v67_v58 = vmul.f32 1.442695, %v54_v52 }
  0x9b   :  { %v48_v24 = vpop.xlane.xlu1 %47  ;;  %v46_v26 = vpop.xlane.xlu0 %45  ;;  %311 = vpow2.f32 %v63_v51 }
  0x9c   :  { %v55_v54 = vsub.f32 %v393_v8, %v46_v26  ;;  %313 = vpow2.f32 %v65_v53  ;;  %v56_v59 = vsub.f32 %v388_v7, %v48_v24 }
  0x9d   :  { %315 = vpow2.f32 %v67_v58 }
  0x9e   :  { %v69_v60 = vmul.f32 1.442695, %v55_v54  ;;  %v71_v63 = vmul.f32 1.442695, %v56_v59 }
  0x9f   :  { %v112_v27 = vpop.permute.xlu1 %111 }
  0xa0   :  { %vm132_vm0 = vcmp.eq.s32.totalorder %v421_v25, %v112_v27  ;;  %317 = vpow2.f32 %v69_v60 }
  0xa1   :  { %v289_v31 = vsel %vm132_vm0, 1.0, %v338_v30  ;;  %319 = vpow2.f32 %v71_v63 }
  0xa2   :  { %v186_v32 = vmul.f32 %v426_v28, %v289_v31  ;;  %v156_v47 = vmul.f32 %v289_v31, %v50_v29  ;;  %v306_v62 = vpop.eup %305 }
  0xa3   :  { %v115_v33 = vpop.permute.xlu1 %114  ;;  %v109_v34 = vpop.permute.xlu0 %108 }
  0xa4   :  { %vm133_vm1 = vcmp.eq.s32.totalorder %v421_v25, %v115_v33  ;;  %vm131_vm2 = vcmp.eq.s32.totalorder %v421_v25, %v109_v34  ;;  %195 = vadd.xlane.f32.xlu0 %v186_v32  ;;  %v308_v0 = vpop.eup %307 }
  0xa5   :  { %v290_v38 = vsel %vm133_vm1, 1.0, %v338_v30  ;;  %v288_v39 = vsel %vm131_vm2, 1.0, %v338_v30  ;;  %v310_v1 = vpop.eup %309 }
  0xa6   :  { %v187_v40 = vmul.f32 %v426_v28, %v290_v38  ;;  %v185_v41 = vmul.f32 %v426_v28, %v288_v39  ;;  %v155_v48 = vmul.f32 %v288_v39, %v49_v36  ;;  %v157_v56 = vmul.f32 %v290_v38, %v51_v35  ;;  %v312_v3 = vpop.eup %311 }
  0xa7   :  { %v118_v42 = vpop.permute.xlu1 %117  ;;  %v314_v4 = vpop.eup %313 }
  0xa8   :  { %vm134_vm3 = vcmp.eq.s32.totalorder %v421_v25, %v118_v42  ;;  %197 = vadd.xlane.f32.xlu0 %v187_v40  ;;  %193 = vadd.xlane.f32.xlu1 %v185_v41  ;;  %v316_v5 = vpop.eup %315 }
  0xa9   :  { %v291_v49 = vsel %vm134_vm3, 1.0, %v338_v30 }
  0xaa   :  { %v158_v55 = vmul.f32 %v291_v49, %v52_v44  ;;  %v318_v6 = vpop.eup %317  ;;  %v188_v8 = vmul.f32 %v426_v28, %v291_v49 }
  0xab   :  { %v121_v50 = vpop.permute.xlu1 %120  ;;  %v320_v9 = vpop.eup %319 }
  0xac   :  { %vm135_vm4 = vcmp.eq.s32.totalorder %v421_v25, %v121_v50  ;;  %165 = vadd.xlane.f32.xlu1 %v156_v47  ;;  %163 = vadd.xlane.f32.xlu0 %v155_v48 }
  0xad   :  { %v292_v57 = vsel %vm135_vm4, 1.0, %v338_v30 }
  0xae   :  { %v159_v61 = vmul.f32 %v292_v57, %v53_v46  ;;  %v189_v13 = vmul.f32 %v426_v28, %v292_v57 }
  0xaf   :  { %v124_v2 = vpop.permute.xlu1 %123 }
  0xb0   :  { %169 = vadd.xlane.f32.xlu1 %v158_v55  ;;  %167 = vadd.xlane.f32.xlu0 %v157_v56  ;;  %vm136_vm5 = vcmp.eq.s32.totalorder %v421_v25, %v124_v2 }
  0xb1   :  { %v293_v10 = vsel %vm136_vm5, 1.0, %v338_v30 }
  0xb2   :  { %v160_v12 = vmul.f32 %v293_v10, %v54_v52  ;;  %v190_v16 = vmul.f32 %v426_v28, %v293_v10 }
  0xb3   :  { %v127_v7 = vpop.permute.xlu1 %126 }
  0xb4   :  { %171 = vadd.xlane.f32.xlu1 %v159_v61  ;;  %75 = vadd.xlane.f32.xlu0 %v306_v62  ;;  %vm137_vm6 = vcmp.eq.s32.totalorder %v421_v25, %v127_v7 }
  0xb5   :  { %v294_v14 = vsel %vm137_vm6, 1.0, %v338_v30 }
  0xb6   :  { %v161_v15 = vmul.f32 %v294_v14, %v55_v54  ;;  %v191_v19 = vmul.f32 %v426_v28, %v294_v14 }
  0xb7   :  { %v130_v11 = vpop.permute.xlu1 %129 }
  0xb8   :  { %73 = vadd.xlane.f32.xlu1 %v310_v1  ;;  %77 = vadd.xlane.f32.xlu0 %v308_v0  ;;  %vm138_vm7 = vcmp.eq.s32.totalorder %v421_v25, %v130_v11 }
  0xb9   :  { %v295_v17 = vsel %vm138_vm7, 1.0, %v338_v30 }
  0xba   :  { %v162_v18 = vmul.f32 %v295_v17, %v56_v59  ;;  %v192_v20 = vmul.f32 %v426_v28, %v295_v17 }
  0xbc   :  { %79 = vadd.xlane.f32.xlu1 %v312_v3  ;;  %81 = vadd.xlane.f32.xlu0 %v314_v4 }
  0xc0   :  { %83 = vadd.xlane.f32.xlu1 %v316_v5  ;;  %85 = vadd.xlane.f32.xlu0 %v318_v6 }
  0xc4   :  { %87 = vadd.xlane.f32.xlu1 %v320_v9  ;;  %199 = vadd.xlane.f32.xlu0 %v188_v8 }
  0xc8   :  { %173 = vadd.xlane.f32.xlu1 %v160_v12  ;;  %201 = vadd.xlane.f32.xlu0 %v189_v13 }
  0xcc   :  { %175 = vadd.xlane.f32.xlu1 %v161_v15  ;;  %203 = vadd.xlane.f32.xlu0 %v190_v16 }
  0xd0   :  { %177 = vadd.xlane.f32.xlu1 %v162_v18  ;;  %205 = vadd.xlane.f32.xlu0 %v191_v19 }
  0xd4   :  { %207 = vadd.xlane.f32.xlu1 %v192_v20 }
 0x131   :  { %v196_v21 = vpop.xlane.xlu0 %195 }
 0x132   :  { %v251_v49 = vsel %vm225_vm8, %v196_v21, 0.0 }
 0x135   :  { %v194_v22 = vpop.xlane.xlu1 %193  ;;  %v198_v23 = vpop.xlane.xlu0 %197 }
 0x136   :  { %v250_v44 = vsel %vm225_vm8, %v194_v22, 0.0  ;;  %v253_v63 = vsel %vm225_vm8, %v198_v23, 0.0 }
 0x137   :  { %v252_v52 = vadd.f32 %v251_v49, %v250_v44 }
 0x139   :  { %v166_v24 = vpop.xlane.xlu1 %165  ;;  %v164_v25 = vpop.xlane.xlu0 %163  ;;  %v254_v4 = vadd.f32 %v253_v63, %v252_v52 }
 0x13d   :  { %v170_v26 = vpop.xlane.xlu1 %169  ;;  %v168_v27 = vpop.xlane.xlu0 %167 }
 0x141   :  { %v172_v29 = vpop.xlane.xlu1 %171  ;;  %v76_v31 = vpop.xlane.xlu0 %75 }
 0x142   :  { %321 = vlog2.f32 %v76_v31 }
 0x145   :  { %v74_v30 = vpop.xlane.xlu1 %73  ;;  %v78_v32 = vpop.xlane.xlu0 %77 }
 0x146   :  { %323 = vlog2.f32 %v74_v30 }
 0x147   :  { %325 = vlog2.f32 %v78_v32 }
 0x149   :  { %v80_v33 = vpop.xlane.xlu1 %79  ;;  %v82_v34 = vpop.xlane.xlu0 %81 }
 0x14a   :  { %327 = vlog2.f32 %v80_v33 }
 0x14b   :  { %329 = vlog2.f32 %v82_v34 }
 0x14c   :  { %v322_v28 = vpop.eup %321 }
 0x14d   :  { %v92_v35 = vmul.f32 0.6931472, %v322_v28  ;;  %v84_v36 = vpop.xlane.xlu1 %83  ;;  %v86_v37 = vpop.xlane.xlu0 %85 }
 0x14e   :  { %331 = vlog2.f32 %v84_v36 }
 0x14f   :  { %v210_v38 = vsub.f32 %v92_v35, %v166_v24  ;;  %333 = vlog2.f32 %v86_v37 }
 0x150   :  { %v324_v39 = vpop.eup %323 }
 0x151   :  { %v326_v40 = vpop.eup %325  ;;  %v90_v41 = vmul.f32 0.6931472, %v324_v39  ;;  %v88_v42 = vpop.xlane.xlu1 %87  ;;  %v218_v46 = vmul.f32 %v210_v38, %v196_v21 }
 0x152   :  { %v200_v43 = vpop.xlane.xlu0 %199  ;;  %v94_v45 = vmul.f32 0.6931472, %v326_v40  ;;  %335 = vlog2.f32 %v88_v42 }
 0x153   :  { %v209_v47 = vsub.f32 %v90_v41, %v164_v25  ;;  %v227_v59 = vsel %vm225_vm8, %v218_v46, 0.0  ;;  %v255_v1 = vsel %vm225_vm8, %v200_v43, 0.0 }
 0x154   :  { %v328_v48 = vpop.eup %327  ;;  %v211_v50 = vsub.f32 %v94_v45, %v168_v27  ;;  %v256_v15 = vadd.f32 %v255_v1, %v254_v4 }
 0x155   :  { %v330_v51 = vpop.eup %329  ;;  %v217_v53 = vmul.f32 %v209_v47, %v194_v22  ;;  %v96_v54 = vmul.f32 0.6931472, %v328_v48  ;;  %v174_v55 = vpop.xlane.xlu1 %173 }
 0x156   :  { %v202_v56 = vpop.xlane.xlu0 %201  ;;  %v219_v57 = vmul.f32 %v211_v50, %v198_v23  ;;  %v98_v58 = vmul.f32 0.6931472, %v330_v51 }
 0x157   :  { %v226_v60 = vsel %vm225_vm8, %v217_v53, 0.0  ;;  %v212_v61 = vsub.f32 %v96_v54, %v170_v26  ;;  %v257_v12 = vsel %vm225_vm8, %v202_v56, 0.0 }
 0x158   :  { %v332_v62 = vpop.eup %331  ;;  %v228_v0 = vadd.f32 %v227_v59, %v226_v60  ;;  %v213_v2 = vsub.f32 %v98_v58, %v172_v29  ;;  %v229_v5 = vsel %vm225_vm8, %v219_v57, 0.0  ;;  %v258_v22 = vadd.f32 %v257_v12, %v256_v15 }
 0x159   :  { %v334_v3 = vpop.eup %333  ;;  %v220_v6 = vmul.f32 %v212_v61, %v200_v43  ;;  %v100_v7 = vmul.f32 0.6931472, %v332_v62  ;;  %v176_v8 = vpop.xlane.xlu1 %175 }
 0x15a   :  { %v204_v9 = vpop.xlane.xlu0 %203  ;;  %v230_v10 = vadd.f32 %v229_v5, %v228_v0  ;;  %v221_v11 = vmul.f32 %v213_v2, %v202_v56  ;;  %v102_v13 = vmul.f32 0.6931472, %v334_v3 }
 0x15b   :  { %v231_v14 = vsel %vm225_vm8, %v220_v6, 0.0  ;;  %v214_v16 = vsub.f32 %v100_v7, %v174_v55  ;;  %v259_v20 = vsel %vm225_vm8, %v204_v9, 0.0 }
 0x15c   :  { %v336_v17 = vpop.eup %335  ;;  %v232_v18 = vadd.f32 %v231_v14, %v230_v10  ;;  %v215_v19 = vsub.f32 %v102_v13, %v176_v8  ;;  %v233_v21 = vsel %vm225_vm8, %v221_v11, 0.0  ;;  %v260_v32 = vadd.f32 %v259_v20, %v258_v22 }
 0x15d   :  { %v222_v23 = vmul.f32 %v214_v16, %v204_v9  ;;  %v104_v24 = vmul.f32 0.6931472, %v336_v17  ;;  %v178_v25 = vpop.xlane.xlu1 %177 }
 0x15e   :  { %v206_v26 = vpop.xlane.xlu0 %205  ;;  %v234_v27 = vadd.f32 %v233_v21, %v232_v18 }
 0x15f   :  { %v223_v29 = vmul.f32 %v215_v19, %v206_v26  ;;  %v261_v31 = vsel %vm225_vm8, %v206_v26, 0.0  ;;  %v235_v30 = vsel %vm225_vm8, %v222_v23, 0.0  ;;  %v216_v33 = vsub.f32 %v104_v24, %v178_v25 }
 0x160   :  { %v236_v34 = vadd.f32 %v235_v30, %v234_v27  ;;  %v262_v35 = vadd.f32 %v261_v31, %v260_v32 }
 0x161   :  { %v237_v28 = vsel %vm225_vm8, %v223_v29, 0.0  ;;  %v208_v36 = vpop.xlane.xlu1 %207 }
 0x162   :  { %v224_v37 = vmul.f32 %v216_v33, %v208_v36  ;;  %v263_v38 = vsel %vm225_vm8, %v208_v36, 0.0  ;;  %v238_v39 = vadd.f32 %v237_v28, %v236_v34 }
 0x163   :  { %v264_v40 = vadd.f32 %v263_v38, %v262_v35 }
 0x164   :  { %v239_v41 = vsel %vm225_vm8, %v224_v37, 0.0 }
 0x165   :  { %265 = vadd.xlane.f32.xlu1 %v264_v40  ;;  %v240_v42 = vadd.f32 %v239_v41, %v238_v39 }
 0x167   :  { %241 = vadd.xlane.f32.xlu0 %v240_v42 }
 0x1f2   :  { %v266_v43 = vpop.xlane.xlu1 %265 }
 0x1f3   :  { %v267_v44 = vrot.slane %v266_v43, 4 }
 0x1f4   :  { %v242_v45 = vpop.xlane.xlu0 %241 }
 0x1f5   :  { %v268_v46 = vadd.f32 %v267_v44, %v266_v43  ;;  %v243_v47 = vrot.slane %v242_v45, 4 }
 0x1f7   :  { %v269_v48 = vrot.slane %v268_v46, 2  ;;  %v244_v49 = vadd.f32 %v243_v47, %v242_v45 }
 0x1f9   :  { %v270_v50 = vadd.f32 %v269_v48, %v268_v46  ;;  %v245_v51 = vrot.slane %v244_v49, 2 }
 0x1fb   :  { %v246_v52 = vadd.f32 %v245_v51, %v244_v49  ;;  %v271_v53 = vrot.slane %v270_v50, 1 }
 0x1fd   :  { %v247_v54 = vrot.slane %v246_v52, 1  ;;  %v272_v56 = vadd.f32 %v271_v53, %v270_v50 }
 0x1ff   :  { %v248_v55 = vadd.f32 %v247_v54, %v246_v52 }
 0x201   :  { %297 = vpush %v248_v55 }
 0x202   :  { %299 = vpush %v272_v56 }
 0x232   :  { %s298_s1 = spop %297 }
 0x233   :  { %v274_v57 = vstv %s298_s1  ;;  %s300_s2 = spop %299 }
 0x234   :  { %276 = vst [vmem:[%s480_s3] sm:$0xff] %v274_v57  ;;  %v277_v58 = vstv %s300_s2 }
 0x235   :  { %279 = vst [vmem:[%s481_s4] sm:$0xff] %v277_v58 }

</bundles_post_ra>
